<compile_context>
chip_gen: v7x
topology: tpu7x:2x2x1
jax: 0.10.0
libtpu: 0.0.40
codegen_flags: <defaults>
</compile_context>

<pallas_src>
import functools

import jax
import jax.numpy as jnp
from jax.experimental import pallas as pl
from jax.experimental.pallas import tpu as pltpu


# --------------------------------------------------------------------------
# config (small, deterministic, consistent with the module's __init__)
# --------------------------------------------------------------------------
BATCH = 2
SEQ = 8
INPUT_SIZE = 32
OUTPUT_SIZE = 16
HIDDEN_DIM = 64
NUM_LAYERS = 3      # -> GELU, Linear(in, hid), GELU, Linear(hid, out)
WIDTH = 2

LANE = 128                # vreg lane width
MAX_ROWS_PER_TILE = 512   # M-tile cap (v5e/v6e); halve for v7x's 32 MiB scoped VMEM


def _round_up(n, m):
    return ((n + m - 1) // m) * m


def _gelu_exact(x):
    # PyTorch nn.GELU() default: exact erf formulation.
    return 0.5 * x * (1.0 + jax.lax.erf(x * 0.7071067811865476))


# --------------------------------------------------------------------------
# one-time parameter packing (outside the hot path)
# --------------------------------------------------------------------------
def pack_mlp_params(w1, b1, w2, b2, *, lane=LANE, mxu_dtype=jnp.bfloat16):
    """Pack per-branch weights so the kernel runs two lane-dense matmuls.

    w1: (width, D_in, hid) -> (D_in, n1p)   columns grouped per branch,
                                            zero-padded to a lane multiple
    b1: (width, hid)       -> (1, n1p)      (f32, added after f32 accumulate)
    w2: (width, hid, out)  -> block-diagonal (n1p, n2p), zero-padded lanes
    b2: (width, out)       -> (1, n2p)

    The zero-padded hidden columns are harmless: bias 0 + GELU(0) = 0 and the
    corresponding rows of w2p are zero.  The padded output columns are zero
    and are sliced off in the wrapper; padding makes every store a full
    unmasked 128-lane vst.
    Weights are cast to bf16 here (one-time) so the MXU gets native feeds on
    v6e/v7x; biases stay f32 since they are added to the f32 accumulator.
    """
    width, d_in, hid = w1.shape
    out_dim = w2.shape[-1]
    n1, n2 = width * hid, width * out_dim
    n1p, n2p = _round_up(n1, lane), _round_up(n2, lane)

    w1p = jnp.zeros((d_in, n1p), jnp.float32).at[:, :n1].set(
        jnp.transpose(w1, (1, 0, 2)).reshape(d_in, n1))
    b1p = jnp.zeros((1, n1p), jnp.float32).at[:, :n1].set(b1.reshape(1, n1))

    # Block-diagonal second-layer weight: row index = w*hid + h,
    # col index = v*out + o, value = w2[w, h, o] iff w == v else 0.
    eye = jnp.eye(width, dtype=jnp.float32)
    w2bd = (w2[:, :, None, :] * eye[:, None, :, None]).reshape(n1, n2)
    w2p = jnp.zeros((n1p, n2p), jnp.float32).at[:n1, :n2].set(w2bd)
    b2p = jnp.zeros((1, n2p), jnp.float32).at[:, :n2].set(b2.reshape(1, n2))

    return w1p.astype(mxu_dtype), b1p, w2p.astype(mxu_dtype), b2p


# --------------------------------------------------------------------------
# Pallas kernel: one M-tile per grid step, all branches in the lane axis
# --------------------------------------------------------------------------
def _mlp_kernel(x_ref, w1_ref, b1_ref, w2_ref, b2_ref, o_ref):
    # GELU(x) computed once for all branches, in f32 on the VPU.
    gx = _gelu_exact(x_ref[...].astype(jnp.float32))                # (TM, D_in)

    # Layer 1: bf16 MXU feeds, f32 accumulate.
    h = jnp.dot(gx.astype(jnp.bfloat16), w1_ref[...],
                preferred_element_type=jnp.float32)                 # (TM, n1p)
    h = _gelu_exact(h + b1_ref[...])

    # Layer 2: block-diagonal packed weight -> one dot covers every branch.
    y = jnp.dot(h.astype(jnp.bfloat16), w2_ref[...],
                preferred_element_type=jnp.float32)                 # (TM, n2p)

    # Single lane-dense (128-lane) store: no masked vst, no in-kernel reshape.
    o_ref[...] = (y + b2_ref[...]).astype(o_ref.dtype)


@functools.partial(jax.jit, static_argnames=("width", "out_dim"))
def mlp_task_module(x, w1p, b1p, w2p, b2p, *, width=WIDTH, out_dim=OUTPUT_SIZE):
    """x: (B, S, D_in); packed params from pack_mlp_params.

    Returns (B, width*S, out_dim), matching torch.cat([...], dim=-2).
    """
    B, S, d_in = x.shape
    M = B * S
    n1p = w1p.shape[-1]
    n2p = w2p.shape[-1]

    # M-tiling: at the toy size this is a single tile (grid of 1); at real
    # token counts it pipelines HBM<->VMEM and shards across v7x's two TCs.
    tm = min(MAX_ROWS_PER_TILE, _round_up(M, 8))
    mp = _round_up(M, tm)

    x2 = x.reshape(M, d_in)
    if mp != M:
        x2 = jnp.pad(x2, ((0, mp - M), (0, 0)))

    out = pl.pallas_call(
        _mlp_kernel,
        out_shape=jax.ShapeDtypeStruct((mp, n2p), x.dtype),
        grid_spec=pltpu.PrefetchScalarGridSpec(
            num_scalar_prefetch=0,
            grid=(mp // tm,),
            in_specs=[
                pl.BlockSpec((tm, d_in), lambda i: (i, 0)),   # x tile
                pl.BlockSpec((d_in, n1p), lambda i: (0, 0)),  # w1p (resident)
                pl.BlockSpec((1, n1p), lambda i: (0, 0)),     # b1p
                pl.BlockSpec((n1p, n2p), lambda i: (0, 0)),   # w2p (resident)
                pl.BlockSpec((1, n2p), lambda i: (0, 0)),     # b2p
            ],
            out_specs=pl.BlockSpec((tm, n2p), lambda i: (i, 0)),
        ),
        compiler_params=pltpu.CompilerParams(
            dimension_semantics=("parallel",)),
    )(x2, w1p, b1p, w2p, b2p)

    # Wrapper-side: drop zero-padded lanes, de-interleave branches into the
    # torch.cat(dim=-2) ordering: out[b, w*S + s, :] = branch_w(x)[b, s, :].
    y = out[:M, :width * out_dim].reshape(B, S, width, out_dim)
    y = jnp.transpose(y, (0, 2, 1, 3)).reshape(B, width * S, out_dim)
    return y


# --------------------------------------------------------------------------
# pure-JAX reference (uses the UNPACKED parameters -> independent check)
# --------------------------------------------------------------------------
def _reference(x, w1, b1, w2, b2, width):
    outs = []
    for w in range(width):
        h = _gelu_exact(x.astype(jnp.float32))
        h = _gelu_exact(h @ w1[w] + b1[w])
        y = h @ w2[w] + b2[w]
        outs.append(y.astype(x.dtype))
    return jnp.concatenate(outs, axis=-2)


if __name__ == "__main__":
    key = jax.random.PRNGKey(0)
    kx, k1, k2, k3, k4 = jax.random.split(key, 5)

    x = jax.random.normal(kx, (BATCH, SEQ, INPUT_SIZE), dtype=jnp.float32)

    # Synthetic parameters (nn.Linear weights stored as (in, out) so the
    # kernel computes x @ W + b).
    w1 = jax.random.normal(k1, (WIDTH, INPUT_SIZE, HIDDEN_DIM), jnp.float32) * 0.05
    b1 = jax.random.normal(k2, (WIDTH, HIDDEN_DIM), jnp.float32) * 0.01
    w2 = jax.random.normal(k3, (WIDTH, HIDDEN_DIM, OUTPUT_SIZE), jnp.float32) * 0.05
    b2 = jax.random.normal(k4, (WIDTH, OUTPUT_SIZE), jnp.float32) * 0.01

    # One-time packing (model-load time in practice).
    w1p, b1p, w2p, b2p = pack_mlp_params(w1, b1, w2, b2)

    y = mlp_task_module(x, w1p, b1p, w2p, b2p, width=WIDTH, out_dim=OUTPUT_SIZE)
    y = jax.block_until_ready(y)

    y_ref = _reference(x, w1, b1, w2, b2, WIDTH)
    assert y.shape == (BATCH, WIDTH * SEQ, OUTPUT_SIZE), y.shape
    # bf16 MXU feeds (f32 accumulate) -> small deviation vs. the exact-f32
    # reference; tolerance relaxed accordingly.
    assert jnp.allclose(y, y_ref, atol=1e-2, rtol=1e-2), float(
        jnp.max(jnp.abs(y - y_ref)))

    print("KERNEL_OK")
</pallas_src>

<mosaic_0001>
module attributes {stable_mosaic.version = 11 : i64} {
  func.func @_mlp_kernel(%arg0: i32, %arg1: memref<16x32xf32, #tpu.memory_space<vmem>>, %arg2: memref<32x128xbf16, #tpu.memory_space<vmem>>, %arg3: memref<1x128xf32, #tpu.memory_space<vmem>>, %arg4: memref<128x128xbf16, #tpu.memory_space<vmem>>, %arg5: memref<1x128xf32, #tpu.memory_space<vmem>>, %arg6: memref<16x128xf32, #tpu.memory_space<vmem>>) attributes {dimension_semantics = [#tpu.dimension_semantics<parallel>], iteration_bounds = array<i64: 1>, scalar_prefetch = 0 : i64, scratch_operands = 0 : i64, tpu.core_type = #tpu.core_type<tc>, window_params = [{transform_indices = @transform_0, window_bounds = array<i64: 16, 32>}, {pipeline_mode = #tpu.pipeline_mode<synchronous>, transform_indices = @transform_1, window_bounds = array<i64: 32, 128>}, {pipeline_mode = #tpu.pipeline_mode<synchronous>, transform_indices = @transform_2, window_bounds = array<i64: 1, 128>}, {pipeline_mode = #tpu.pipeline_mode<synchronous>, transform_indices = @transform_3, window_bounds = array<i64: 128, 128>}, {pipeline_mode = #tpu.pipeline_mode<synchronous>, transform_indices = @transform_4, window_bounds = array<i64: 1, 128>}, {transform_indices = @transform_5, window_bounds = array<i64: 16, 128>}]} {
    %c0 = arith.constant 0 : index
    %c0_0 = arith.constant 0 : index
    %0 = vector.load %arg1[%c0, %c0_0] : memref<16x32xf32, #tpu.memory_space<vmem>>, vector<16x32xf32>
    %cst = arith.constant 5.000000e-01 : f32
    %1 = vector.broadcast %cst : f32 to vector<16x32xf32>
    %2 = arith.mulf %1, %0 : vector<16x32xf32>
    %cst_1 = arith.constant 0.707106769 : f32
    %3 = vector.broadcast %cst_1 : f32 to vector<16x32xf32>
    %4 = arith.mulf %0, %3 : vector<16x32xf32>
    %5 = math.erf %4 : vector<16x32xf32>
    %cst_2 = arith.constant 1.000000e+00 : f32
    %6 = vector.broadcast %cst_2 : f32 to vector<16x32xf32>
    %7 = arith.addf %6, %5 : vector<16x32xf32>
    %8 = arith.mulf %2, %7 : vector<16x32xf32>
    %9 = arith.truncf %8 : vector<16x32xf32> to vector<16x32xbf16>
    %c0_3 = arith.constant 0 : index
    %c0_4 = arith.constant 0 : index
    %10 = vector.load %arg2[%c0_3, %c0_4] : memref<32x128xbf16, #tpu.memory_space<vmem>>, vector<32x128xbf16>
    %cst_5 = arith.constant dense<0.000000e+00> : vector<16x128xf32>
    %11 = tpu.matmul %9, %10, %cst_5 {dimension_numbers = #tpu.dot_dimension_numbers<[1], [0], [0], [1], [0, 0, 1, 1], [], []>} : vector<16x32xbf16>, vector<32x128xbf16>, vector<16x128xf32> -> vector<16x128xf32>
    %c0_6 = arith.constant 0 : index
    %c0_7 = arith.constant 0 : index
    %12 = vector.load %arg3[%c0_6, %c0_7] : memref<1x128xf32, #tpu.memory_space<vmem>>, vector<1x128xf32>
    %13 = vector.broadcast %12 : vector<1x128xf32> to vector<16x128xf32>
    %14 = arith.addf %11, %13 : vector<16x128xf32>
    %cst_8 = arith.constant 5.000000e-01 : f32
    %15 = vector.broadcast %cst_8 : f32 to vector<16x128xf32>
    %16 = arith.mulf %15, %14 : vector<16x128xf32>
    %cst_9 = arith.constant 0.707106769 : f32
    %17 = vector.broadcast %cst_9 : f32 to vector<16x128xf32>
    %18 = arith.mulf %14, %17 : vector<16x128xf32>
    %19 = math.erf %18 : vector<16x128xf32>
    %cst_10 = arith.constant 1.000000e+00 : f32
    %20 = vector.broadcast %cst_10 : f32 to vector<16x128xf32>
    %21 = arith.addf %20, %19 : vector<16x128xf32>
    %22 = arith.mulf %16, %21 : vector<16x128xf32>
    %23 = arith.truncf %22 : vector<16x128xf32> to vector<16x128xbf16>
    %c0_11 = arith.constant 0 : index
    %c0_12 = arith.constant 0 : index
    %24 = vector.load %arg4[%c0_11, %c0_12] : memref<128x128xbf16, #tpu.memory_space<vmem>>, vector<128x128xbf16>
    %cst_13 = arith.constant dense<0.000000e+00> : vector<16x128xf32>
    %25 = tpu.matmul %23, %24, %cst_13 {dimension_numbers = #tpu.dot_dimension_numbers<[1], [0], [0], [1], [0, 0, 1, 1], [], []>} : vector<16x128xbf16>, vector<128x128xbf16>, vector<16x128xf32> -> vector<16x128xf32>
    %c0_14 = arith.constant 0 : index
    %c0_15 = arith.constant 0 : index
    %26 = vector.load %arg5[%c0_14, %c0_15] : memref<1x128xf32, #tpu.memory_space<vmem>>, vector<1x128xf32>
    %27 = vector.broadcast %26 : vector<1x128xf32> to vector<16x128xf32>
    %28 = arith.addf %25, %27 : vector<16x128xf32>
    %c0_16 = arith.constant 0 : index
    %c0_17 = arith.constant 0 : index
    %29 = vector.load %arg6[%c0_16, %c0_17] : memref<16x128xf32, #tpu.memory_space<vmem>>, vector<16x128xf32>
    tpu.vector_store %arg6[%c0_16, %c0_17], %28 {strides = array<i32>} : memref<16x128xf32, #tpu.memory_space<vmem>>, vector<16x128xf32>,
    return
  }
  func.func @transform_0(%arg0: i32) -> (i32, i32) {
    %c0_i32 = arith.constant 0 : i32
    %c0_i32_0 = arith.constant 0 : i32
    return %arg0, %c0_i32 : i32, i32
  }
  func.func @transform_1(%arg0: i32) -> (i32, i32) {
    %c0_i32 = arith.constant 0 : i32
    %c0_i32_0 = arith.constant 0 : i32
    %c0_i32_1 = arith.constant 0 : i32
    return %c0_i32, %c0_i32_0 : i32, i32
  }
  func.func @transform_2(%arg0: i32) -> (i32, i32) {
    %c0_i32 = arith.constant 0 : i32
    %c0_i32_0 = arith.constant 0 : i32
    %c0_i32_1 = arith.constant 0 : i32
    return %c0_i32, %c0_i32_0 : i32, i32
  }
  func.func @transform_3(%arg0: i32) -> (i32, i32) {
    %c0_i32 = arith.constant 0 : i32
    %c0_i32_0 = arith.constant 0 : i32
    %c0_i32_1 = arith.constant 0 : i32
    return %c0_i32, %c0_i32_0 : i32, i32
  }
  func.func @transform_4(%arg0: i32) -> (i32, i32) {
    %c0_i32 = arith.constant 0 : i32
    %c0_i32_0 = arith.constant 0 : i32
    %c0_i32_1 = arith.constant 0 : i32
    return %c0_i32, %c0_i32_0 : i32, i32
  }
  func.func @transform_5(%arg0: i32) -> (i32, i32) {
    %c0_i32 = arith.constant 0 : i32
    %c0_i32_0 = arith.constant 0 : i32
    return %arg0, %c0_i32 : i32, i32
  }
}

</mosaic_0001>

<bundles_post_ra>
// kernel: mlp_task_module.1
= control target key start
LH: loop header
LB: loop body
LE: loop exit
PB: predicated region body
PF: predicated region fallthrough
CT: control target
= control target key end

     0   :  { %10 = vsyncpa [#allocation3], 0  ;;  %s517_s0 = inlined_call_operand.hbm [shape: f32[16,32], index: 0, kind: input, shape index: {}]   ;;  %s518_s1 = inlined_call_operand.hbm [shape: bf16[32,128], index: 1, kind: input, shape index: {}]   ;;  %s519_s2 = inlined_call_operand.vmem [shape: f32[1,128], index: 2, kind: input, shape index: {}]   ;;  %s520_s3 = inlined_call_operand.hbm [shape: bf16[128,128], index: 3, kind: input, shape index: {}]   ;;  %s521_s4 = inlined_call_operand.vmem [shape: f32[1,128], index: 4, kind: input, shape index: {}]   ;;  %s522_s5 = inlined_call_operand.vmem [shape: f32[16,128], index: 5, kind: output, shape index: {}]  }
   0x1   :  { %11 = vsyncpa [#allocation5], 0  ;;  %s424_s18 = smov [#allocation4]   ;;  %s354_s22 = scalar_lea.hbm %s518_s1, 256 }
   0x2   :  { %s29_s19 = sshll.u32 %s424_s18, 4  ;;  %p355_p0 = scmp.ne.s32.totalorder %s518_s1, %s354_s22  ;;  %s30_s19 = int_to_ptr.vmem [resolvable:$true] %s29_s19 }
   0x3   :  { %p358_p1 = scmp.lt.u32.totalorder %s354_s22, %s518_s1 }
   0x5   :  { %p360_p2 = pnand %p358_p1, %p355_p0 }
   0x7   :  { %363 = shalt.err (!%p360_p2)
}
   0x8   :  { %s364_s27 = scalar_lea.vmem %s30_s19, 256  ;;  %p369_p4 = scmp.lt.s32.totalorder %s30_s19, %s30_s19 }
   0x9   :  { %p365_p3 = scmp.ne.s32.totalorder %s30_s19, %s364_s27  ;;  %p370_p5 = scmp.lt.s32.totalorder %s364_s27, %s364_s27 }
   0xb   :  { %p371_p6 = por %p370_p5, %p369_p4 }
   0xd   :  { %p372_p7 = pnand %p371_p6, %p365_p3 }
   0xf   :  { %375 = shalt.err (!%p372_p7)
}
  0x10   :  { %s425_s28 = smov 64   ;;  %s426_s29 = smov 4  }
  0x11   :  { %35 = dma.hbm_to_vmem [thread:$0]  %s518_s1, 256, %s30_s19, [#allocation5], %s425_s28, %s425_s28, %s426_s29  }
  0x12   :  { %s427_s7 = smov [#allocation2]   ;;  %s376_s11 = scalar_lea.hbm %s517_s0, 256 }
  0x13   :  { %s17_s8 = sshll.u32 %s427_s7, 4  ;;  %p377_p8 = scmp.ne.s32.totalorder %s517_s0, %s376_s11  ;;  %s18_s8 = int_to_ptr.vmem [resolvable:$true] %s17_s8 }
  0x14   :  { %p380_p9 = scmp.lt.u32.totalorder %s376_s11, %s517_s0 }
  0x16   :  { %p382_p10 = pnand %p380_p9, %p377_p8 }
  0x18   :  { %385 = shalt.err (!%p382_p10)
}
  0x19   :  { %s386_s16 = scalar_lea.vmem %s18_s8, 256  ;;  %p391_p12 = scmp.lt.s32.totalorder %s18_s8, %s18_s8 }
  0x1a   :  { %p387_p11 = scmp.ne.s32.totalorder %s18_s8, %s386_s16  ;;  %p392_p13 = scmp.lt.s32.totalorder %s386_s16, %s386_s16 }
  0x1c   :  { %p393_p0 = por %p392_p13, %p391_p12 }
  0x1e   :  { %p394_p1 = pnand %p393_p0, %p387_p11 }
  0x20   :  { %397 = shalt.err (!%p394_p1)
}
  0x21   :  { %s428_s1 = smov 128   ;;  %s429_s17 = smov 8  }
  0x22   :  { %23 = dma.hbm_to_vmem [thread:$0]  %s517_s0, 256, %s18_s8, [#allocation3], %s428_s1, %s428_s1, %s429_s17  }
  0x23   :  { %s430_s20 = smov [#allocation6]   ;;  %s398_s24 = scalar_lea.hbm %s520_s3, 1024 }
  0x24   :  { %s43_s21 = sshll.u32 %s430_s20, 4  ;;  %p399_p2 = scmp.ne.s32.totalorder %s520_s3, %s398_s24  ;;  %s44_s21 = int_to_ptr.vmem [resolvable:$true] %s43_s21 }
  0x25   :  { %p402_p3 = scmp.lt.u32.totalorder %s398_s24, %s520_s3 }
  0x27   :  { %p404_p4 = pnand %p402_p3, %p399_p2 }
  0x29   :  { %407 = shalt.err (!%p404_p4)
}
  0x2a   :  { %s408_s6 = scalar_lea.vmem %s44_s21, 1024  ;;  %p413_p6 = scmp.lt.s32.totalorder %s44_s21, %s44_s21 }
  0x2b   :  { %p409_p5 = scmp.ne.s32.totalorder %s44_s21, %s408_s6  ;;  %p414_p7 = scmp.lt.s32.totalorder %s408_s6, %s408_s6 }
  0x2d   :  { %p415_p8 = por %p414_p7, %p413_p6 }
  0x2f   :  { %p416_p9 = pnand %p415_p8, %p409_p5 }
  0x31   :  { %419 = shalt.err (!%p416_p9)
}
  0x32   :  { %49 = dma.hbm_to_vmem [thread:$0]  %s520_s3, 1024, %s44_s21, [#allocation5], %s425_s28, %s425_s28, %s426_s29  }
  0x33   :  { %420 = dma.done.wait [#allocation3], 256  }
  0x34   :  { %421 = vsyncadd [#allocation3], 4294967040 }
  0x35   :  { %422 = dma.done.wait [#allocation5], 1280  }
  0x36   :  { %423 = vsyncadd [#allocation5], 4294966016  ;;  %v431_v0 = vmov 0.0   ;;  %vm432_vm0 = vmmov 0   ;;  %v336_v1 = vld [vmem:[#allocation4] sm:$0xff]   ;;  %v337_v2 = vld [vmem:[#allocation4 + $0x8] sm:$0xff]  }
  0x37   :  { %299 = vmatprep.subr.bf16.mxu0 %v431_v0  ;;  %303 = vmatprep.mubr.msk.bf16.mxu0 %vm432_vm0, %v431_v0  ;;  %v62_v3 = vld [vmem:[#allocation2] sm:$0xff]  ;;  %v63_v4 = vld [vmem:[#allocation2 + $0x8] sm:$0xff]  ;;  %vm98_vm1 = vcmask 261120   ;;  %v340_v18 = vld [vmem:[#allocation6 + $0x10] sm:$0xff]  }
  0x38   :  { %307 = vmatprep.subr.bf16.mxu1 %v431_v0  ;;  %323 = vmatprep.mubr.msk.bf16.mxu1 %vm432_vm0, %v431_v0  ;;  %v66_v5 = vmul.f32 0.70710677, %v62_v3  ;;  %v67_v6 = vmul.f32 0.70710677, %v63_v4  ;;  %v338_v7 = vld [vmem:[#allocation6] sm:$0xff]   ;;  %v339_v8 = vld [vmem:[#allocation6 + $0x8] sm:$0xff]  }
  0x39   :  { %300 = vmatpush3.bf16.msra.mxu0 %v336_v1  ;;  %308 = vmatpush3.bf16.msra.mxu1 %v338_v7  ;;  %v64_v9 = vmul.f32 0.5, %v62_v3  ;;  %v65_v11 = vmul.f32 0.5, %v63_v4  ;;  %v341_v19 = vld [vmem:[#allocation6 + $0x18] sm:$0xff]   ;;  %v342_v20 = vld [vmem:[#allocation6 + $0x20] sm:$0xff]   ;;  %v343_v21 = vld [vmem:[#allocation6 + $0x28] sm:$0xff]  }
  0x3a   :  { %301 = vmatprep.subr.bf16.mxu0 %v431_v0  ;;  %346 = verf.f32 %v66_v5  ;;  %309 = vmatprep.subr.bf16.mxu1 %v431_v0  ;;  %v344_v22 = vld [vmem:[#allocation6 + $0x30] sm:$0xff]   ;;  %v345_v23 = vld [vmem:[#allocation6 + $0x38] sm:$0xff]   ;;  %v274_v24 = vld [vmem:[%s519_s2] ss:$0 sm:$0xff] }
  0x3b   :  { %348 = verf.f32 %v67_v6  ;;  %v278_v42 = vld [vmem:[%s521_s4] ss:$0 sm:$0xff] }
  0x3d   :  { %302 = vmatpush3.bf16.msra.mxu0 %v337_v2  ;;  %310 = vmatpush3.bf16.msra.mxu1 %v339_v8 }
  0x3e   :  { %311 = vmatprep.subr.bf16.mxu1 %v431_v0 }
  0x41   :  { %312 = vmatpush3.bf16.msra.mxu1 %v340_v18 }
  0x42   :  { %313 = vmatprep.subr.bf16.mxu1 %v431_v0 }
  0x44   :  { %v347_v10 = vpop.eup %346 }
  0x45   :  { %v349_v12 = vpop.eup %348  ;;  %v70_v13 = vadd.f32 1.0, %v347_v10  ;;  %314 = vmatpush3.bf16.msra.mxu1 %v341_v19 }
  0x46   :  { %v71_v14 = vadd.f32 1.0, %v349_v12  ;;  %315 = vmatprep.subr.bf16.mxu1 %v431_v0 }
  0x47   :  { %v72_v15 = vmul.f32 %v70_v13, %v64_v9 }
  0x48   :  { %v73_v16 = vmul.f32 %v71_v14, %v65_v11 }
  0x49   :  { %316 = vmatpush3.bf16.msra.mxu1 %v342_v20 }
  0x4a   :  { %v74_v17 = vpack.c.bf16 %v73_v16, %v72_v15  ;;  %317 = vmatprep.subr.bf16.mxu1 %v431_v0 }
  0x4c   :  { %304 = vmatmul.mubr.msk.bf16.vlgmr.msra.gmra.mrb[0].mxu0 %vm98_vm1, %v74_v17 }
  0x4d   :  { %318 = vmatpush3.bf16.msra.mxu1 %v343_v21 }
  0x4e   :  { %319 = vmatprep.subr.bf16.mxu1 %v431_v0 }
  0x51   :  { %320 = vmatpush3.bf16.msra.mxu1 %v344_v22 }
  0x52   :  { %321 = vmatprep.subr.bf16.mxu1 %v431_v0 }
  0x55   :  { %322 = vmatpush3.bf16.msra.mxu1 %v345_v23 }
 0x11f   :  { %v136_v25 = vpop.f32.mrb[0].mxu0 }
 0x120   :  { %v137_v26 = vadd.f32 %v274_v24, %v136_v25  ;;  %v305_v27 = vpop.f32.mrb[1].mxu0 }
 0x121   :  { %v139_v28 = vpop.f32.mrb[2].mxu0 }
 0x122   :  { %v145_v29 = vmul.f32 0.70710677, %v137_v26  ;;  %v140_v30 = vadd.f32 %v274_v24, %v139_v28  ;;  %v306_v31 = vpop.f32.mrb[3].mxu0  ;;  %v143_v36 = vmul.f32 0.5, %v137_v26 }
 0x124   :  { %350 = verf.f32 %v145_v29  ;;  %v146_v32 = vmul.f32 0.70710677, %v140_v30  ;;  %v144_v37 = vmul.f32 0.5, %v140_v30 }
 0x126   :  { %352 = verf.f32 %v146_v32 }
 0x12e   :  { %v351_v33 = vpop.eup %350 }
 0x12f   :  { %v149_v34 = vadd.f32 1.0, %v351_v33 }
 0x130   :  { %v353_v35 = vpop.eup %352 }
 0x131   :  { %v150_v38 = vadd.f32 1.0, %v353_v35  ;;  %v151_v39 = vmul.f32 %v149_v34, %v143_v36 }
 0x133   :  { %v152_v40 = vmul.f32 %v150_v38, %v144_v37 }
 0x135   :  { %v153_v41 = vpack.c.bf16 %v152_v40, %v151_v39 }
 0x137   :  { %324 = vmatmul.mubr.bf16.vlgmr.msra.gmra.mrb[0].mxu1 %v153_v41 }
 0x20a   :  { %v259_v43 = vpop.f32.mrb[0].mxu1 }
 0x20b   :  { %v260_v44 = vadd.f32 %v278_v42, %v259_v43  ;;  %v325_v45 = vpop.f32.mrb[1].mxu1 }
 0x20c   :  { %v262_v46 = vpop.f32.mrb[2].mxu1 }
 0x20d   :  { %266 = vst [vmem:[%s522_s5] sm:$0xff] %v260_v44  ;;  %v263_v47 = vadd.f32 %v278_v42, %v262_v46  ;;  %v326_v48 = vpop.f32.mrb[3].mxu1 }
 0x20f   :  { %267 = vst [vmem:[%s522_s5 + $0x8] sm:$0xff] %v263_v47 }
 0x210   :  { %272 = vsyncpa [#allocation3], 1 }
 0x211   :  { %273 = vsyncpa [#allocation5], 1 }

</bundles_post_ra>
